<compile_context>
chip_gen: v7x
topology: tpu7x:2x2x1
jax: 0.10.0
libtpu: 0.0.40
codegen_flags: <defaults>
</compile_context>

<pallas_src>
import functools
import math

import jax
import jax.numpy as jnp
from jax import lax
from jax.experimental import pallas as pl
from jax.experimental.pallas import tpu as pltpu

# ---------------- toy config (deterministic, eval mode) ----------------
B = 2              # batch
T = 8              # sequence length
C = 32             # n_embd
N_HEAD = 4
HD = C // N_HEAD   # head dim
WIDE = 4           # wide_factor
N_LAYER = 2
VOCAB = 128        # vocab_size (multiple of 128 -> lane-dense logits)
BLOCK_SIZE = 16    # max positions (wpe rows)
MU = 0.5           # config.mu
S_PARAM = 0.0      # config.s
EPS = 1e-5         # nn.LayerNorm default
SCALE = math.sqrt(1.0 / (C ** (1.0 + S_PARAM)))   # model's `scale` buffer


def _layernorm(x, g, b, eps):
    mean = jnp.mean(x, axis=-1, keepdims=True)
    xc = x - mean
    var = jnp.mean(xc * xc, axis=-1, keepdims=True)
    return xc * lax.rsqrt(var + eps) * g + b


def _gelu_tanh(x):
    return 0.5 * x * (1.0 + jnp.tanh(0.7978845608028654 * (x + 0.044715 * x * x * x)))


# ---------------- kernel 1: all Blocks fused (residual stream resident in VMEM) ----------------
def _blocks_kernel(x_ref, g1_ref, b1_ref, wqkv_ref, wao_ref,
                   g2_ref, b2_ref, wfc_ref, wmp_ref,
                   o_ref, s_scr, ao_scr,
                   *, mu, n_head, head_dim, eps):
    layer = pl.program_id(1)

    # Layer 0: bring the residual stream into the VMEM-resident output block.
    @pl.when(layer == 0)
    def _():
        o_ref[...] = x_ref[...]

    x = o_ref[...]                                  # (T, C) f32, resident across layers
    t, c = x.shape

    # ---- attention half: x = mu*x + proj(causal_mha(LN1(x))) ----
    xn = _layernorm(x, g1_ref[...], b1_ref[...], eps)
    qkv = jnp.dot(xn.astype(jnp.bfloat16), wqkv_ref[...],
                  preferred_element_type=jnp.float32)           # (T, 3C), f32 accumulation
    q = qkv[:, :c] * (1.0 / math.sqrt(head_dim))    # scale folded into q once
    k = qkv[:, c:2 * c]
    v = qkv[:, 2 * c:]

    row = lax.broadcasted_iota(jnp.int32, (t, t), 0)
    col = lax.broadcasted_iota(jnp.int32, (t, t), 1)
    causal = row >= col

    # Per-head scores stacked on the sublane axis -> ONE softmax over (H*T, T).
    for h in range(n_head):                         # static unroll, tiny dots
        sl = slice(h * head_dim, (h + 1) * head_dim)
        s_h = jnp.dot(q[:, sl], k[:, sl].T, preferred_element_type=jnp.float32)
        s_scr[h * t:(h + 1) * t, :] = jnp.where(causal, s_h, -1e30)

    s = s_scr[...]                                  # (H*T, T)
    m = jnp.max(s, axis=-1, keepdims=True)
    e = jnp.exp(s - m)
    p = e * pl.reciprocal(jnp.sum(e, axis=-1, keepdims=True), approx=True)

    # Head outputs written straight into a (T, C) scratch (no concatenate).
    for h in range(n_head):
        sl = slice(h * head_dim, (h + 1) * head_dim)
        ao_scr[:, sl] = jnp.dot(p[h * t:(h + 1) * t, :], v[:, sl],
                                preferred_element_type=jnp.float32)

    y = jnp.dot(ao_scr[...].astype(jnp.bfloat16), wao_ref[...],
                preferred_element_type=jnp.float32)
    x = mu * x + y

    # ---- MLP half: x = mu*x + proj(gelu_tanh(fc(LN2(x)))) ----
    xn2 = _layernorm(x, g2_ref[...], b2_ref[...], eps)
    hmid = jnp.dot(xn2.astype(jnp.bfloat16), wfc_ref[...],
                   preferred_element_type=jnp.float32)          # (T, WIDE*C)
    hmid = _gelu_tanh(hmid)
    y2 = jnp.dot(hmid.astype(jnp.bfloat16), wmp_ref[...],
                 preferred_element_type=jnp.float32)
    # TODO(synk): dropout omitted (eval-mode identity, config.dropout = 0).
    o_ref[...] = mu * x + y2


# ---------------- kernel 2: ln_f (+ folded scale buffer) -> lm_head, lane-dense logits ----------------
def _final_head_kernel(x_ref, g_ref, b_ref, w_ref, o_ref, *, eps):
    xn = _layernorm(x_ref[...], g_ref[...], b_ref[...], eps)
    # TODO(synk): at real vocab/embd sizes this dot should also take the bf16 MXU path.
    o_ref[...] = jnp.dot(xn, w_ref[...], preferred_element_type=jnp.float32)


# ---------------- wrappers ----------------
def blocks_forward(x, p):
    kernel = functools.partial(_blocks_kernel, mu=MU, n_head=N_HEAD,
                               head_dim=HD, eps=EPS)

    def layer_spec(r, ccols):
        return pl.BlockSpec((pl.Squeezed(), r, ccols), lambda b, l: (l, 0, 0))

    return pl.pallas_call(
        kernel,
        out_shape=jax.ShapeDtypeStruct((B, T, C), jnp.float32),
        grid=(B, N_LAYER),
        in_specs=[
            pl.BlockSpec((pl.Squeezed(), T, C), lambda b, l: (b, 0, 0)),   # x
            layer_spec(1, C), layer_spec(1, C),                            # ln_1 gamma/beta
            layer_spec(C, 3 * C), layer_spec(C, C),                        # w_qkv, w_attn_proj
            layer_spec(1, C), layer_spec(1, C),                            # ln_2 gamma/beta
            layer_spec(C, WIDE * C), layer_spec(WIDE * C, C),              # w_fc, w_mlp_proj
        ],
        out_specs=pl.BlockSpec((pl.Squeezed(), T, C), lambda b, l: (b, 0, 0)),
        scratch_shapes=[
            pltpu.VMEM((N_HEAD * T, T), jnp.float32),   # stacked attention scores
            pltpu.VMEM((T, C), jnp.float32),            # attention-output accumulator
        ],
        input_output_aliases={0: 0},                    # residual stream updated in place
        compiler_params=pltpu.CompilerParams(
            dimension_semantics=("parallel", "arbitrary")),
    )(x, p["ln1_g"], p["ln1_b"], p["w_qkv"], p["w_attn_proj"],
      p["ln2_g"], p["ln2_b"], p["w_fc"], p["w_mlp_proj"])


def final_head_forward(x, p):
    kernel = functools.partial(_final_head_kernel, eps=EPS)
    g_eff = p["lnf_g"] * SCALE                          # fold `scale` buffer into ln_f affine
    b_eff = p["lnf_b"] * SCALE
    w_lm = p["wte"].T                                   # weight tying: lm_head.weight = wte
    return pl.pallas_call(
        kernel,
        out_shape=jax.ShapeDtypeStruct((B, T, VOCAB), jnp.float32),
        grid=(B,),
        in_specs=[
            pl.BlockSpec((pl.Squeezed(), T, C), lambda b: (b, 0, 0)),
            pl.BlockSpec((1, C), lambda b: (0, 0)),
            pl.BlockSpec((1, C), lambda b: (0, 0)),
            pl.BlockSpec((C, VOCAB), lambda b: (0, 0)),
        ],
        out_specs=pl.BlockSpec((pl.Squeezed(), T, VOCAB), lambda b: (b, 0, 0)),
        compiler_params=pltpu.CompilerParams(dimension_semantics=("parallel",)),
    )(x, g_eff, b_eff, w_lm)


@jax.jit
def model_forward(idx, p):
    # TODO(synk): token/position embedding gather + dropout(p=0) stay in plain JAX
    # (data-dependent row gather; not worth a Pallas kernel at this size).
    pos = jnp.arange(T, dtype=jnp.int32)
    x = p["wte"][idx] + p["wpe"][pos][None, :, :]
    x = blocks_forward(x, p)
    return final_head_forward(x, p)


# ---------------- pure-JAX f32 reference (mirrors the PyTorch module) ----------------
def _layernorm_ref(x, g, b):
    mean = jnp.mean(x, axis=-1, keepdims=True)
    var = jnp.mean((x - mean) ** 2, axis=-1, keepdims=True)
    return (x - mean) * lax.rsqrt(var + EPS) * g + b


def model_forward_ref(idx, p):
    pos = jnp.arange(T, dtype=jnp.int32)
    x = p["wte"][idx] + p["wpe"][pos][None, :, :]
    mask = jnp.tril(jnp.ones((T, T), bool))
    for l in range(N_LAYER):
        w_qkv = p["w_qkv"][l].astype(jnp.float32)
        w_ao = p["w_attn_proj"][l].astype(jnp.float32)
        w_fc = p["w_fc"][l].astype(jnp.float32)
        w_mp = p["w_mlp_proj"][l].astype(jnp.float32)
        # attention branch
        xn = _layernorm_ref(x, p["ln1_g"][l, 0], p["ln1_b"][l, 0])
        qkv = xn @ w_qkv
        q, k, v = jnp.split(qkv, 3, axis=-1)
        q = q.reshape(B, T, N_HEAD, HD).transpose(0, 2, 1, 3)
        k = k.reshape(B, T, N_HEAD, HD).transpose(0, 2, 1, 3)
        v = v.reshape(B, T, N_HEAD, HD).transpose(0, 2, 1, 3)
        s = jnp.einsum("bhqd,bhkd->bhqk", q, k) / math.sqrt(HD)
        s = jnp.where(mask, s, -1e30)
        a = jax.nn.softmax(s, axis=-1)
        o = jnp.einsum("bhqk,bhkd->bhqd", a, v).transpose(0, 2, 1, 3).reshape(B, T, C)
        x = MU * x + o @ w_ao
        # mlp branch
        xn = _layernorm_ref(x, p["ln2_g"][l, 0], p["ln2_b"][l, 0])
        x = MU * x + _gelu_tanh(xn @ w_fc) @ w_mp
    xn = _layernorm_ref(x, p["lnf_g"][0], p["lnf_b"][0])
    return SCALE * (xn @ p["wte"].T)


# ---------------- main ----------------
if __name__ == "__main__":
    key = jax.random.PRNGKey(0)
    ks = jax.random.split(key, 12)

    idx = jax.random.randint(ks[0], (B, T), 0, VOCAB, dtype=jnp.int32)

    def kaiming(k, shape):  # weights stored pre-transposed as (in, out); fan_in = shape[-2]
        return jax.random.normal(k, shape, jnp.float32) / math.sqrt(shape[-2])

    params = {
        # embeddings (f32; lm_head weight tied to wte)
        "wte": jax.random.normal(ks[1], (VOCAB, C), jnp.float32),
        "wpe": jax.random.normal(ks[2], (BLOCK_SIZE, C), jnp.float32),
        # per-layer LayerNorm affine, stacked over layers
        "ln1_g": 1.0 + 0.1 * jax.random.normal(ks[3], (N_LAYER, 1, C), jnp.float32),
        "ln1_b": 0.05 * jax.random.normal(ks[4], (N_LAYER, 1, C), jnp.float32),
        "ln2_g": 1.0 + 0.1 * jax.random.normal(ks[5], (N_LAYER, 1, C), jnp.float32),
        "ln2_b": 0.05 * jax.random.normal(ks[6], (N_LAYER, 1, C), jnp.float32),
        "lnf_g": 1.0 + 0.1 * jax.random.normal(ks[7], (1, C), jnp.float32),
        "lnf_b": 0.05 * jax.random.normal(ks[8], (1, C), jnp.float32),
        # per-layer linear weights, pre-transposed to (in, out), stored bf16
        # (what the MXU consumes); the f32 reference upcasts the same values.
        "w_qkv": kaiming(ks[9], (N_LAYER, C, 3 * C)).astype(jnp.bfloat16),
        "w_attn_proj": kaiming(ks[10], (N_LAYER, C, C)).astype(jnp.bfloat16),
        "w_fc": kaiming(ks[11], (N_LAYER, C, WIDE * C)).astype(jnp.bfloat16),
        "w_mlp_proj": kaiming(jax.random.fold_in(key, 99),
                              (N_LAYER, WIDE * C, C)).astype(jnp.bfloat16),
    }

    out = jax.block_until_ready(model_forward(idx, params))
    ref = jax.block_until_ready(model_forward_ref(idx, params))

    assert out.shape == (B, T, VOCAB)
    # bf16 matmul operands + EUP approx reciprocal in the softmax -> loosened
    # tolerance (f32 accumulation keeps the error well inside this bound).
    assert jnp.allclose(out, ref, atol=1e-1, rtol=1e-1), "mismatch vs JAX reference"
    print("KERNEL_OK")
</pallas_src>

<mosaic_0001>
module attributes {stable_mosaic.version = 11 : i64} {
  func.func @_final_head_kernel(%arg0: i32, %arg1: memref<1x8x32xf32, #tpu.memory_space<vmem>>, %arg2: memref<1x32xf32, #tpu.memory_space<vmem>>, %arg3: memref<1x32xf32, #tpu.memory_space<vmem>>, %arg4: memref<32x128xf32, #tpu.memory_space<vmem>>, %arg5: memref<1x8x128xf32, #tpu.memory_space<vmem>>) attributes {dimension_semantics = [#tpu.dimension_semantics<parallel>], iteration_bounds = array<i64: 2>, scalar_prefetch = 0 : i64, scratch_operands = 0 : i64, tpu.core_type = #tpu.core_type<tc>, window_params = [{transform_indices = @transform_0, window_bounds = array<i64: 1, 8, 32>}, {pipeline_mode = #tpu.pipeline_mode<synchronous>, transform_indices = @transform_1, window_bounds = array<i64: 1, 32>}, {pipeline_mode = #tpu.pipeline_mode<synchronous>, transform_indices = @transform_2, window_bounds = array<i64: 1, 32>}, {pipeline_mode = #tpu.pipeline_mode<synchronous>, transform_indices = @transform_3, window_bounds = array<i64: 32, 128>}, {transform_indices = @transform_4, window_bounds = array<i64: 1, 8, 128>}]} {
    %c0 = arith.constant 0 : index
    %c0_0 = arith.constant 0 : index
    %c0_1 = arith.constant 0 : index
    %0 = vector.load %arg1[%c0, %c0_0, %c0_1] : memref<1x8x32xf32, #tpu.memory_space<vmem>>, vector<1x8x32xf32>
    %1 = vector.shape_cast %0 : vector<1x8x32xf32> to vector<8x32xf32>
    %c0_2 = arith.constant 0 : index
    %c0_3 = arith.constant 0 : index
    %2 = vector.load %arg2[%c0_2, %c0_3] : memref<1x32xf32, #tpu.memory_space<vmem>>, vector<1x32xf32>
    %c0_4 = arith.constant 0 : index
    %c0_5 = arith.constant 0 : index
    %3 = vector.load %arg3[%c0_4, %c0_5] : memref<1x32xf32, #tpu.memory_space<vmem>>, vector<1x32xf32>
    %cst = arith.constant dense<0.000000e+00> : vector<8xf32>
    %4 = vector.multi_reduction <add>, %1, %cst [1] : vector<8x32xf32> to vector<8xf32>
    %5 = vector.shape_cast %4 : vector<8xf32> to vector<8x1xf32>
    %cst_6 = arith.constant 3.200000e+01 : f32
    %6 = vector.broadcast %cst_6 : f32 to vector<8x1xf32>
    %7 = arith.divf %5, %6 : vector<8x1xf32>
    %8 = vector.broadcast %7 : vector<8x1xf32> to vector<8x32xf32>
    %9 = arith.subf %1, %8 : vector<8x32xf32>
    %10 = arith.mulf %9, %9 : vector<8x32xf32>
    %cst_7 = arith.constant dense<0.000000e+00> : vector<8xf32>
    %11 = vector.multi_reduction <add>, %10, %cst_7 [1] : vector<8x32xf32> to vector<8xf32>
    %12 = vector.shape_cast %11 : vector<8xf32> to vector<8x1xf32>
    %cst_8 = arith.constant 3.200000e+01 : f32
    %13 = vector.broadcast %cst_8 : f32 to vector<8x1xf32>
    %14 = arith.divf %12, %13 : vector<8x1xf32>
    %cst_9 = arith.constant 9.99999974E-6 : f32
    %15 = vector.broadcast %cst_9 : f32 to vector<8x1xf32>
    %16 = arith.addf %14, %15 : vector<8x1xf32>
    %17 = math.rsqrt %16 : vector<8x1xf32>
    %18 = vector.broadcast %17 : vector<8x1xf32> to vector<8x32xf32>
    %19 = arith.mulf %9, %18 : vector<8x32xf32>
    %20 = vector.broadcast %2 : vector<1x32xf32> to vector<8x32xf32>
    %21 = arith.mulf %19, %20 : vector<8x32xf32>
    %22 = vector.broadcast %3 : vector<1x32xf32> to vector<8x32xf32>
    %23 = arith.addf %21, %22 : vector<8x32xf32>
    %c0_10 = arith.constant 0 : index
    %c0_11 = arith.constant 0 : index
    %24 = vector.load %arg4[%c0_10, %c0_11] : memref<32x128xf32, #tpu.memory_space<vmem>>, vector<32x128xf32>
    %cst_12 = arith.constant dense<0.000000e+00> : vector<8x128xf32>
    %25 = tpu.matmul %23, %24, %cst_12 {dimension_numbers = #tpu.dot_dimension_numbers<[1], [0], [0], [1], [0, 0, 1, 1], [], []>} : vector<8x32xf32>, vector<32x128xf32>, vector<8x128xf32> -> vector<8x128xf32>
    %c0_13 = arith.constant 0 : index
    %c0_14 = arith.constant 0 : index
    %c0_15 = arith.constant 0 : index
    %26 = vector.load %arg5[%c0_13, %c0_14, %c0_15] : memref<1x8x128xf32, #tpu.memory_space<vmem>>, vector<1x8x128xf32>
    %27 = vector.shape_cast %26 : vector<1x8x128xf32> to vector<8x128xf32>
    %28 = vector.shape_cast %25 : vector<8x128xf32> to vector<1x8x128xf32>
    tpu.vector_store %arg5[%c0_13, %c0_14, %c0_15], %28 {strides = array<i32>} : memref<1x8x128xf32, #tpu.memory_space<vmem>>, vector<1x8x128xf32>,
    return
  }
  func.func @transform_0(%arg0: i32) -> (i32, i32, i32) {
    %c0_i32 = arith.constant 0 : i32
    %c0_i32_0 = arith.constant 0 : i32
    %c0_i32_1 = arith.constant 0 : i32
    return %arg0, %c0_i32, %c0_i32_0 : i32, i32, i32
  }
  func.func @transform_1(%arg0: i32) -> (i32, i32) {
    %c0_i32 = arith.constant 0 : i32
    %c0_i32_0 = arith.constant 0 : i32
    %c0_i32_1 = arith.constant 0 : i32
    return %c0_i32, %c0_i32_0 : i32, i32
  }
  func.func @transform_2(%arg0: i32) -> (i32, i32) {
    %c0_i32 = arith.constant 0 : i32
    %c0_i32_0 = arith.constant 0 : i32
    %c0_i32_1 = arith.constant 0 : i32
    return %c0_i32, %c0_i32_0 : i32, i32
  }
  func.func @transform_3(%arg0: i32) -> (i32, i32) {
    %c0_i32 = arith.constant 0 : i32
    %c0_i32_0 = arith.constant 0 : i32
    %c0_i32_1 = arith.constant 0 : i32
    return %c0_i32, %c0_i32_0 : i32, i32
  }
  func.func @transform_4(%arg0: i32) -> (i32, i32, i32) {
    %c0_i32 = arith.constant 0 : i32
    %c0_i32_0 = arith.constant 0 : i32
    %c0_i32_1 = arith.constant 0 : i32
    return %arg0, %c0_i32, %c0_i32_0 : i32, i32, i32
  }
}

module attributes {stable_mosaic.version = 11 : i64} {
  func.func @_blocks_kernel(%arg0: i32, %arg1: i32, %arg2: memref<1x8x32xf32, #tpu.memory_space<vmem>>, %arg3: memref<1x1x32xf32, #tpu.memory_space<vmem>>, %arg4: memref<1x1x32xf32, #tpu.memory_space<vmem>>, %arg5: memref<1x32x96xbf16, #tpu.memory_space<vmem>>, %arg6: memref<1x32x32xbf16, #tpu.memory_space<vmem>>, %arg7: memref<1x1x32xf32, #tpu.memory_space<vmem>>, %arg8: memref<1x1x32xf32, #tpu.memory_space<vmem>>, %arg9: memref<1x32x128xbf16, #tpu.memory_space<vmem>>, %arg10: memref<1x128x32xbf16, #tpu.memory_space<vmem>>, %arg11: memref<1x8x32xf32, #tpu.memory_space<vmem>>, %arg12: memref<32x8xf32, #tpu.memory_space<vmem>>, %arg13: memref<8x32xf32, #tpu.memory_space<vmem>>) attributes {dimension_semantics = [#tpu.dimension_semantics<parallel>, #tpu.dimension_semantics<arbitrary>], iteration_bounds = array<i64: 2, 2>, scalar_prefetch = 0 : i64, scratch_operands = 2 : i64, tpu.core_type = #tpu.core_type<tc>, window_params = [{transform_indices = @transform_0, window_bounds = array<i64: 1, 8, 32>}, {transform_indices = @transform_1, window_bounds = array<i64: 1, 1, 32>}, {transform_indices = @transform_2, window_bounds = array<i64: 1, 1, 32>}, {transform_indices = @transform_3, window_bounds = array<i64: 1, 32, 96>}, {transform_indices = @transform_4, window_bounds = array<i64: 1, 32, 32>}, {transform_indices = @transform_5, window_bounds = array<i64: 1, 1, 32>}, {transform_indices = @transform_6, window_bounds = array<i64: 1, 1, 32>}, {transform_indices = @transform_7, window_bounds = array<i64: 1, 32, 128>}, {transform_indices = @transform_8, window_bounds = array<i64: 1, 128, 32>}, {transform_indices = @transform_9, window_bounds = array<i64: 1, 8, 32>}]} {
    %c0_i32 = arith.constant 0 : i32
    %0 = arith.cmpi eq, %arg1, %c0_i32 : i32
    %1 = arith.extui %0 : i1 to i32
    %c0_i32_0 = arith.constant 0 : i32
    %2 = arith.cmpi ne, %1, %c0_i32_0 : i32
    scf.if %2 {
      %c0_81 = arith.constant 0 : index
      %c0_82 = arith.constant 0 : index
      %c0_83 = arith.constant 0 : index
      %155 = vector.load %arg2[%c0_81, %c0_82, %c0_83] : memref<1x8x32xf32, #tpu.memory_space<vmem>>, vector<1x8x32xf32>
      %156 = vector.shape_cast %155 : vector<1x8x32xf32> to vector<8x32xf32>
      %c0_84 = arith.constant 0 : index
      %c0_85 = arith.constant 0 : index
      %c0_86 = arith.constant 0 : index
      %157 = vector.load %arg11[%c0_84, %c0_85, %c0_86] : memref<1x8x32xf32, #tpu.memory_space<vmem>>, vector<1x8x32xf32>
      %158 = vector.shape_cast %157 : vector<1x8x32xf32> to vector<8x32xf32>
      %159 = vector.shape_cast %156 : vector<8x32xf32> to vector<1x8x32xf32>
      tpu.vector_store %arg11[%c0_84, %c0_85, %c0_86], %159 {strides = array<i32>} : memref<1x8x32xf32, #tpu.memory_space<vmem>>, vector<1x8x32xf32>,
    } else {
    }
    %c0 = arith.constant 0 : index
    %c0_1 = arith.constant 0 : index
    %c0_2 = arith.constant 0 : index
    %3 = vector.load %arg11[%c0, %c0_1, %c0_2] : memref<1x8x32xf32, #tpu.memory_space<vmem>>, vector<1x8x32xf32>
    %4 = vector.shape_cast %3 : vector<1x8x32xf32> to vector<8x32xf32>
    %c0_3 = arith.constant 0 : index
    %c0_4 = arith.constant 0 : index
    %c0_5 = arith.constant 0 : index
    %5 = vector.load %arg3[%c0_3, %c0_4, %c0_5] : memref<1x1x32xf32, #tpu.memory_space<vmem>>, vector<1x1x32xf32>
    %6 = vector.shape_cast %5 : vector<1x1x32xf32> to vector<1x32xf32>
    %c0_6 = arith.constant 0 : index
    %c0_7 = arith.constant 0 : index
    %c0_8 = arith.constant 0 : index
    %7 = vector.load %arg4[%c0_6, %c0_7, %c0_8] : memref<1x1x32xf32, #tpu.memory_space<vmem>>, vector<1x1x32xf32>
    %8 = vector.shape_cast %7 : vector<1x1x32xf32> to vector<1x32xf32>
    %cst = arith.constant dense<0.000000e+00> : vector<8xf32>
    %9 = vector.multi_reduction <add>, %4, %cst [1] : vector<8x32xf32> to vector<8xf32>
    %10 = vector.shape_cast %9 : vector<8xf32> to vector<8x1xf32>
    %cst_9 = arith.constant 3.200000e+01 : f32
    %11 = vector.broadcast %cst_9 : f32 to vector<8x1xf32>
    %12 = arith.divf %10, %11 : vector<8x1xf32>
    %13 = vector.broadcast %12 : vector<8x1xf32> to vector<8x32xf32>
    %14 = arith.subf %4, %13 : vector<8x32xf32>
    %15 = arith.mulf %14, %14 : vector<8x32xf32>
    %cst_10 = arith.constant dense<0.000000e+00> : vector<8xf32>
    %16 = vector.multi_reduction <add>, %15, %cst_10 [1] : vector<8x32xf32> to vector<8xf32>
    %17 = vector.shape_cast %16 : vector<8xf32> to vector<8x1xf32>
    %cst_11 = arith.constant 3.200000e+01 : f32
    %18 = vector.broadcast %cst_11 : f32 to vector<8x1xf32>
    %19 = arith.divf %17, %18 : vector<8x1xf32>
    %cst_12 = arith.constant 9.99999974E-6 : f32
    %20 = vector.broadcast %cst_12 : f32 to vector<8x1xf32>
    %21 = arith.addf %19, %20 : vector<8x1xf32>
    %22 = math.rsqrt %21 : vector<8x1xf32>
    %23 = vector.broadcast %22 : vector<8x1xf32> to vector<8x32xf32>
    %24 = arith.mulf %14, %23 : vector<8x32xf32>
    %25 = vector.broadcast %6 : vector<1x32xf32> to vector<8x32xf32>
    %26 = arith.mulf %24, %25 : vector<8x32xf32>
    %27 = vector.broadcast %8 : vector<1x32xf32> to vector<8x32xf32>
    %28 = arith.addf %26, %27 : vector<8x32xf32>
    %29 = arith.truncf %28 : vector<8x32xf32> to vector<8x32xbf16>
    %c0_13 = arith.constant 0 : index
    %c0_14 = arith.constant 0 : index
    %c0_15 = arith.constant 0 : index
    %30 = vector.load %arg5[%c0_13, %c0_14, %c0_15] : memref<1x32x96xbf16, #tpu.memory_space<vmem>>, vector<1x32x96xbf16>
    %31 = vector.shape_cast %30 : vector<1x32x96xbf16> to vector<32x96xbf16>
    %cst_16 = arith.constant dense<0.000000e+00> : vector<8x96xf32>
    %32 = tpu.matmul %29, %31, %cst_16 {dimension_numbers = #tpu.dot_dimension_numbers<[1], [0], [0], [1], [0, 0, 1, 1], [], []>} : vector<8x32xbf16>, vector<32x96xbf16>, vector<8x96xf32> -> vector<8x96xf32>
    %33 = vector.extract_strided_slice %32 {offsets = [0, 0], sizes = [8, 32], strides = [1, 1]} : vector<8x96xf32> to vector<8x32xf32>
    %cst_17 = arith.constant 0.353553385 : f32
    %34 = vector.broadcast %cst_17 : f32 to vector<8x32xf32>
    %35 = arith.mulf %33, %34 : vector<8x32xf32>
    %36 = vector.extract_strided_slice %32 {offsets = [0, 32], sizes = [8, 32], strides = [1, 1]} : vector<8x96xf32> to vector<8x32xf32>
    %37 = vector.extract_strided_slice %32 {offsets = [0, 64], sizes = [8, 32], strides = [1, 1]} : vector<8x96xf32> to vector<8x32xf32>
    %38 = tpu.iota {dimensions = array<i32: 0>} : vector<8x8xi32>
    %39 = tpu.iota {dimensions = array<i32: 1>} : vector<8x8xi32>
    %40 = arith.cmpi sge, %38, %39 : vector<8x8xi32>
    %41 = vector.extract_strided_slice %35 {offsets = [0, 0], sizes = [8, 8], strides = [1, 1]} : vector<8x32xf32> to vector<8x8xf32>
    %42 = vector.extract_strided_slice %36 {offsets = [0, 0], sizes = [8, 8], strides = [1, 1]} : vector<8x32xf32> to vector<8x8xf32>
    %43 = tpu.transpose %42, [1, 0] : vector<8x8xf32> -> vector<8x8xf32>
    %cst_18 = arith.constant dense<0.000000e+00> : vector<8x8xf32>
    %44 = tpu.matmul %41, %43, %cst_18 {dimension_numbers = #tpu.dot_dimension_numbers<[1], [0], [0], [1], [0, 0, 1, 1], [], []>} : vector<8x8xf32>, vector<8x8xf32>, vector<8x8xf32> -> vector<8x8xf32>
    %cst_19 = arith.constant -1.000000e+30 : f32
    %45 = vector.broadcast %cst_19 : f32 to vector<8x8xf32>
    %46 = arith.select %40, %44, %45 : vector<8x8xi1>, vector<8x8xf32>
    %c0_20 = arith.constant 0 : index
    %c0_21 = arith.constant 0 : index
    %47 = vector.load %arg12[%c0_20, %c0_21] : memref<32x8xf32, #tpu.memory_space<vmem>>, vector<8x8xf32>
    tpu.vector_store %arg12[%c0_20, %c0_21], %46 {strides = array<i32>} : memref<32x8xf32, #tpu.memory_space<vmem>>, vector<8x8xf32>,
    %48 = vector.extract_strided_slice %35 {offsets = [0, 8], sizes = [8, 8], strides = [1, 1]} : vector<8x32xf32> to vector<8x8xf32>
    %49 = vector.extract_strided_slice %36 {offsets = [0, 8], sizes = [8, 8], strides = [1, 1]} : vector<8x32xf32> to vector<8x8xf32>
    %50 = tpu.transpose %49, [1, 0] : vector<8x8xf32> -> vector<8x8xf32>
    %cst_22 = arith.constant dense<0.000000e+00> : vector<8x8xf32>
    %51 = tpu.matmul %48, %50, %cst_22 {dimension_numbers = #tpu.dot_dimension_numbers<[1], [0], [0], [1], [0, 0, 1, 1], [], []>} : vector<8x8xf32>, vector<8x8xf32>, vector<8x8xf32> -> vector<8x8xf32>
    %cst_23 = arith.constant -1.000000e+30 : f32
    %52 = vector.broadcast %cst_23 : f32 to vector<8x8xf32>
    %53 = arith.select %40, %51, %52 : vector<8x8xi1>, vector<8x8xf32>
    %c8 = arith.constant 8 : index
    %c0_24 = arith.constant 0 : index
    %54 = vector.load %arg12[%c8, %c0_24] : memref<32x8xf32, #tpu.memory_space<vmem>>, vector<8x8xf32>
    tpu.vector_store %arg12[%c8, %c0_24], %53 {strides = array<i32>} : memref<32x8xf32, #tpu.memory_space<vmem>>, vector<8x8xf32>,
    %55 = vector.extract_strided_slice %35 {offsets = [0, 16], sizes = [8, 8], strides = [1, 1]} : vector<8x32xf32> to vector<8x8xf32>
    %56 = vector.extract_strided_slice %36 {offsets = [0, 16], sizes = [8, 8], strides = [1, 1]} : vector<8x32xf32> to vector<8x8xf32>
    %57 = tpu.transpose %56, [1, 0] : vector<8x8xf32> -> vector<8x8xf32>
    %cst_25 = arith.constant dense<0.000000e+00> : vector<8x8xf32>
    %58 = tpu.matmul %55, %57, %cst_25 {dimension_numbers = #tpu.dot_dimension_numbers<[1], [0], [0], [1], [0, 0, 1, 1], [], []>} : vector<8x8xf32>, vector<8x8xf32>, vector<8x8xf32> -> vector<8x8xf32>
    %cst_26 = arith.constant -1.000000e+30 : f32
    %59 = vector.broadcast %cst_26 : f32 to vector<8x8xf32>
    %60 = arith.select %40, %58, %59 : vector<8x8xi1>, vector<8x8xf32>
    %c16 = arith.constant 16 : index
    %c0_27 = arith.constant 0 : index
    %61 = vector.load %arg12[%c16, %c0_27] : memref<32x8xf32, #tpu.memory_space<vmem>>, vector<8x8xf32>
    tpu.vector_store %arg12[%c16, %c0_27], %60 {strides = array<i32>} : memref<32x8xf32, #tpu.memory_space<vmem>>, vector<8x8xf32>,
    %62 = vector.extract_strided_slice %35 {offsets = [0, 24], sizes = [8, 8], strides = [1, 1]} : vector<8x32xf32> to vector<8x8xf32>
    %63 = vector.extract_strided_slice %36 {offsets = [0, 24], sizes = [8, 8], strides = [1, 1]} : vector<8x32xf32> to vector<8x8xf32>
    %64 = tpu.transpose %63, [1, 0] : vector<8x8xf32> -> vector<8x8xf32>
    %cst_28 = arith.constant dense<0.000000e+00> : vector<8x8xf32>
    %65 = tpu.matmul %62, %64, %cst_28 {dimension_numbers = #tpu.dot_dimension_numbers<[1], [0], [0], [1], [0, 0, 1, 1], [], []>} : vector<8x8xf32>, vector<8x8xf32>, vector<8x8xf32> -> vector<8x8xf32>
    %cst_29 = arith.constant -1.000000e+30 : f32
    %66 = vector.broadcast %cst_29 : f32 to vector<8x8xf32>
    %67 = arith.select %40, %65, %66 : vector<8x8xi1>, vector<8x8xf32>
    %c24 = arith.constant 24 : index
    %c0_30 = arith.constant 0 : index
    %68 = vector.load %arg12[%c24, %c0_30] : memref<32x8xf32, #tpu.memory_space<vmem>>, vector<8x8xf32>
    tpu.vector_store %arg12[%c24, %c0_30], %67 {strides = array<i32>} : memref<32x8xf32, #tpu.memory_space<vmem>>, vector<8x8xf32>,
    %c0_31 = arith.constant 0 : index
    %c0_32 = arith.constant 0 : index
    %69 = vector.load %arg12[%c0_31, %c0_32] : memref<32x8xf32, #tpu.memory_space<vmem>>, vector<32x8xf32>
    %cst_33 = arith.constant dense<0xFF800000> : vector<32xf32>
    %70 = vector.multi_reduction <maximumf>, %69, %cst_33 [1] : vector<32x8xf32> to vector<32xf32>
    %71 = vector.shape_cast %70 : vector<32xf32> to vector<32x1xf32>
    %72 = vector.broadcast %71 : vector<32x1xf32> to vector<32x8xf32>
    %73 = arith.subf %69, %72 : vector<32x8xf32>
    %74 = math.exp %73 : vector<32x8xf32>
    %cst_34 = arith.constant dense<0.000000e+00> : vector<32xf32>
    %75 = vector.multi_reduction <add>, %74, %cst_34 [1] : vector<32x8xf32> to vector<32xf32>
    %76 = vector.shape_cast %75 : vector<32xf32> to vector<32x1xf32>
    %77 = tpu.reciprocal %76 {approx = true} : vector<32x1xf32> -> vector<32x1xf32>
    %78 = vector.broadcast %77 : vector<32x1xf32> to vector<32x8xf32>
    %79 = arith.mulf %74, %78 : vector<32x8xf32>
    %80 = vector.extract_strided_slice %79 {offsets = [0, 0], sizes = [8, 8], strides = [1, 1]} : vector<32x8xf32> to vector<8x8xf32>
    %81 = vector.extract_strided_slice %37 {offsets = [0, 0], sizes = [8, 8], strides = [1, 1]} : vector<8x32xf32> to vector<8x8xf32>
    %cst_35 = arith.constant dense<0.000000e+00> : vector<8x8xf32>
    %82 = tpu.matmul %80, %81, %cst_35 {dimension_numbers = #tpu.dot_dimension_numbers<[1], [0], [0], [1], [0, 0, 1, 1], [], []>} : vector<8x8xf32>, vector<8x8xf32>, vector<8x8xf32> -> vector<8x8xf32>
    %c0_36 = arith.constant 0 : index
    %c0_37 = arith.constant 0 : index
    %83 = vector.load %arg13[%c0_36, %c0_37] : memref<8x32xf32, #tpu.memory_space<vmem>>, vector<8x8xf32>
    tpu.vector_store %arg13[%c0_36, %c0_37], %82 {strides = array<i32>} : memref<8x32xf32, #tpu.memory_space<vmem>>, vector<8x8xf32>,
    %84 = vector.extract_strided_slice %79 {offsets = [8, 0], sizes = [8, 8], strides = [1, 1]} : vector<32x8xf32> to vector<8x8xf32>
    %85 = vector.extract_strided_slice %37 {offsets = [0, 8], sizes = [8, 8], strides = [1, 1]} : vector<8x32xf32> to vector<8x8xf32>
    %cst_38 = arith.constant dense<0.000000e+00> : vector<8x8xf32>
    %86 = tpu.matmul %84, %85, %cst_38 {dimension_numbers = #tpu.dot_dimension_numbers<[1], [0], [0], [1], [0, 0, 1, 1], [], []>} : vector<8x8xf32>, vector<8x8xf32>, vector<8x8xf32> -> vector<8x8xf32>
    %c0_39 = arith.constant 0 : index
    %c8_40 = arith.constant 8 : index
    %87 = vector.load %arg13[%c0_39, %c8_40] : memref<8x32xf32, #tpu.memory_space<vmem>>, vector<8x8xf32>
    tpu.vector_store %arg13[%c0_39, %c8_40], %86 {strides = array<i32>} : memref<8x32xf32, #tpu.memory_space<vmem>>, vector<8x8xf32>,
    %88 = vector.extract_strided_slice %79 {offsets = [16, 0], sizes = [8, 8], strides = [1, 1]} : vector<32x8xf32> to vector<8x8xf32>
    %89 = vector.extract_strided_slice %37 {offsets = [0, 16], sizes = [8, 8], strides = [1, 1]} : vector<8x32xf32> to vector<8x8xf32>
    %cst_41 = arith.constant dense<0.000000e+00> : vector<8x8xf32>
    %90 = tpu.matmul %88, %89, %cst_41 {dimension_numbers = #tpu.dot_dimension_numbers<[1], [0], [0], [1], [0, 0, 1, 1], [], []>} : vector<8x8xf32>, vector<8x8xf32>, vector<8x8xf32> -> vector<8x8xf32>
    %c0_42 = arith.constant 0 : index
    %c16_43 = arith.constant 16 : index
    %91 = vector.load %arg13[%c0_42, %c16_43] : memref<8x32xf32, #tpu.memory_space<vmem>>, vector<8x8xf32>
    tpu.vector_store %arg13[%c0_42, %c16_43], %90 {strides = array<i32>} : memref<8x32xf32, #tpu.memory_space<vmem>>, vector<8x8xf32>,
    %92 = vector.extract_strided_slice %79 {offsets = [24, 0], sizes = [8, 8], strides = [1, 1]} : vector<32x8xf32> to vector<8x8xf32>
    %93 = vector.extract_strided_slice %37 {offsets = [0, 24], sizes = [8, 8], strides = [1, 1]} : vector<8x32xf32> to vector<8x8xf32>
    %cst_44 = arith.constant dense<0.000000e+00> : vector<8x8xf32>
    %94 = tpu.matmul %92, %93, %cst_44 {dimension_numbers = #tpu.dot_dimension_numbers<[1], [0], [0], [1], [0, 0, 1, 1], [], []>} : vector<8x8xf32>, vector<8x8xf32>, vector<8x8xf32> -> vector<8x8xf32>
    %c0_45 = arith.constant 0 : index
    %c24_46 = arith.constant 24 : index
    %95 = vector.load %arg13[%c0_45, %c24_46] : memref<8x32xf32, #tpu.memory_space<vmem>>, vector<8x8xf32>
    tpu.vector_store %arg13[%c0_45, %c24_46], %94 {strides = array<i32>} : memref<8x32xf32, #tpu.memory_space<vmem>>, vector<8x8xf32>,
    %c0_47 = arith.constant 0 : index
    %c0_48 = arith.constant 0 : index
    %96 = vector.load %arg13[%c0_47, %c0_48] : memref<8x32xf32, #tpu.memory_space<vmem>>, vector<8x32xf32>
    %97 = arith.truncf %96 : vector<8x32xf32> to vector<8x32xbf16>
    %c0_49 = arith.constant 0 : index
    %c0_50 = arith.constant 0 : index
    %c0_51 = arith.constant 0 : index
    %98 = vector.load %arg6[%c0_49, %c0_50, %c0_51] : memref<1x32x32xbf16, #tpu.memory_space<vmem>>, vector<1x32x32xbf16>
    %99 = vector.shape_cast %98 : vector<1x32x32xbf16> to vector<32x32xbf16>
    %cst_52 = arith.constant dense<0.000000e+00> : vector<8x32xf32>
    %100 = tpu.matmul %97, %99, %cst_52 {dimension_numbers = #tpu.dot_dimension_numbers<[1], [0], [0], [1], [0, 0, 1, 1], [], []>} : vector<8x32xbf16>, vector<32x32xbf16>, vector<8x32xf32> -> vector<8x32xf32>
    %cst_53 = arith.constant 5.000000e-01 : f32
    %101 = vector.broadcast %cst_53 : f32 to vector<8x32xf32>
    %102 = arith.mulf %101, %4 : vector<8x32xf32>
    %103 = arith.addf %102, %100 : vector<8x32xf32>
    %c0_54 = arith.constant 0 : index
    %c0_55 = arith.constant 0 : index
    %c0_56 = arith.constant 0 : index
    %104 = vector.load %arg7[%c0_54, %c0_55, %c0_56] : memref<1x1x32xf32, #tpu.memory_space<vmem>>, vector<1x1x32xf32>
    %105 = vector.shape_cast %104 : vector<1x1x32xf32> to vector<1x32xf32>
    %c0_57 = arith.constant 0 : index
    %c0_58 = arith.constant 0 : index
    %c0_59 = arith.constant 0 : index
    %106 = vector.load %arg8[%c0_57, %c0_58, %c0_59] : memref<1x1x32xf32, #tpu.memory_space<vmem>>, vector<1x1x32xf32>
    %107 = vector.shape_cast %106 : vector<1x1x32xf32> to vector<1x32xf32>
    %cst_60 = arith.constant dense<0.000000e+00> : vector<8xf32>
    %108 = vector.multi_reduction <add>, %103, %cst_60 [1] : vector<8x32xf32> to vector<8xf32>
    %109 = vector.shape_cast %108 : vector<8xf32> to vector<8x1xf32>
    %cst_61 = arith.constant 3.200000e+01 : f32
    %110 = vector.broadcast %cst_61 : f32 to vector<8x1xf32>
    %111 = arith.divf %109, %110 : vector<8x1xf32>
    %112 = vector.broadcast %111 : vector<8x1xf32> to vector<8x32xf32>
    %113 = arith.subf %103, %112 : vector<8x32xf32>
    %114 = arith.mulf %113, %113 : vector<8x32xf32>
    %cst_62 = arith.constant dense<0.000000e+00> : vector<8xf32>
    %115 = vector.multi_reduction <add>, %114, %cst_62 [1] : vector<8x32xf32> to vector<8xf32>
    %116 = vector.shape_cast %115 : vector<8xf32> to vector<8x1xf32>
    %cst_63 = arith.constant 3.200000e+01 : f32
    %117 = vector.broadcast %cst_63 : f32 to vector<8x1xf32>
    %118 = arith.divf %116, %117 : vector<8x1xf32>
    %cst_64 = arith.constant 9.99999974E-6 : f32
    %119 = vector.broadcast %cst_64 : f32 to vector<8x1xf32>
    %120 = arith.addf %118, %119 : vector<8x1xf32>
    %121 = math.rsqrt %120 : vector<8x1xf32>
    %122 = vector.broadcast %121 : vector<8x1xf32> to vector<8x32xf32>
    %123 = arith.mulf %113, %122 : vector<8x32xf32>
    %124 = vector.broadcast %105 : vector<1x32xf32> to vector<8x32xf32>
    %125 = arith.mulf %123, %124 : vector<8x32xf32>
    %126 = vector.broadcast %107 : vector<1x32xf32> to vector<8x32xf32>
    %127 = arith.addf %125, %126 : vector<8x32xf32>
    %128 = arith.truncf %127 : vector<8x32xf32> to vector<8x32xbf16>
    %c0_65 = arith.constant 0 : index
    %c0_66 = arith.constant 0 : index
    %c0_67 = arith.constant 0 : index
    %129 = vector.load %arg9[%c0_65, %c0_66, %c0_67] : memref<1x32x128xbf16, #tpu.memory_space<vmem>>, vector<1x32x128xbf16>
    %130 = vector.shape_cast %129 : vector<1x32x128xbf16> to vector<32x128xbf16>
    %cst_68 = arith.constant dense<0.000000e+00> : vector<8x128xf32>
    %131 = tpu.matmul %128, %130, %cst_68 {dimension_numbers = #tpu.dot_dimension_numbers<[1], [0], [0], [1], [0, 0, 1, 1], [], []>} : vector<8x32xbf16>, vector<32x128xbf16>, vector<8x128xf32> -> vector<8x128xf32>
    %cst_69 = arith.constant 5.000000e-01 : f32
    %132 = vector.broadcast %cst_69 : f32 to vector<8x128xf32>
    %133 = arith.mulf %132, %131 : vector<8x128xf32>
    %cst_70 = arith.constant 4.471500e-02 : f32
    %134 = vector.broadcast %cst_70 : f32 to vector<8x128xf32>
    %135 = arith.mulf %134, %131 : vector<8x128xf32>
    %136 = arith.mulf %135, %131 : vector<8x128xf32>
    %137 = arith.mulf %136, %131 : vector<8x128xf32>
    %138 = arith.addf %131, %137 : vector<8x128xf32>
    %cst_71 = arith.constant 0.797884583 : f32
    %139 = vector.broadcast %cst_71 : f32 to vector<8x128xf32>
    %140 = arith.mulf %139, %138 : vector<8x128xf32>
    %141 = math.tanh %140 : vector<8x128xf32>
    %cst_72 = arith.constant 1.000000e+00 : f32
    %142 = vector.broadcast %cst_72 : f32 to vector<8x128xf32>
    %143 = arith.addf %142, %141 : vector<8x128xf32>
    %144 = arith.mulf %133, %143 : vector<8x128xf32>
    %145 = arith.truncf %144 : vector<8x128xf32> to vector<8x128xbf16>
    %c0_73 = arith.constant 0 : index
    %c0_74 = arith.constant 0 : index
    %c0_75 = arith.constant 0 : index
    %146 = vector.load %arg10[%c0_73, %c0_74, %c0_75] : memref<1x128x32xbf16, #tpu.memory_space<vmem>>, vector<1x128x32xbf16>
    %147 = vector.shape_cast %146 : vector<1x128x32xbf16> to vector<128x32xbf16>
    %cst_76 = arith.constant dense<0.000000e+00> : vector<8x32xf32>
    %148 = tpu.matmul %145, %147, %cst_76 {dimension_numbers = #tpu.dot_dimension_numbers<[1], [0], [0], [1], [0, 0, 1, 1], [], []>} : vector<8x128xbf16>, vector<128x32xbf16>, vector<8x32xf32> -> vector<8x32xf32>
    %cst_77 = arith.constant 5.000000e-01 : f32
    %149 = vector.broadcast %cst_77 : f32 to vector<8x32xf32>
    %150 = arith.mulf %149, %103 : vector<8x32xf32>
    %151 = arith.addf %150, %148 : vector<8x32xf32>
    %c0_78 = arith.constant 0 : index
    %c0_79 = arith.constant 0 : index
    %c0_80 = arith.constant 0 : index
    %152 = vector.load %arg11[%c0_78, %c0_79, %c0_80] : memref<1x8x32xf32, #tpu.memory_space<vmem>>, vector<1x8x32xf32>
    %153 = vector.shape_cast %152 : vector<1x8x32xf32> to vector<8x32xf32>
    %154 = vector.shape_cast %151 : vector<8x32xf32> to vector<1x8x32xf32>
    tpu.vector_store %arg11[%c0_78, %c0_79, %c0_80], %154 {strides = array<i32>} : memref<1x8x32xf32, #tpu.memory_space<vmem>>, vector<1x8x32xf32>,
    return
  }
  func.func @transform_0(%arg0: i32, %arg1: i32) -> (i32, i32, i32) {
    %c0_i32 = arith.constant 0 : i32
    %c0_i32_0 = arith.constant 0 : i32
    %c0_i32_1 = arith.constant 0 : i32
    return %arg0, %c0_i32, %c0_i32_0 : i32, i32, i32
  }
  func.func @transform_1(%arg0: i32, %arg1: i32) -> (i32, i32, i32) {
    %c0_i32 = arith.constant 0 : i32
    %c0_i32_0 = arith.constant 0 : i32
    %c0_i32_1 = arith.constant 0 : i32
    return %arg1, %c0_i32, %c0_i32_0 : i32, i32, i32
  }
  func.func @transform_2(%arg0: i32, %arg1: i32) -> (i32, i32, i32) {
    %c0_i32 = arith.constant 0 : i32
    %c0_i32_0 = arith.constant 0 : i32
    %c0_i32_1 = arith.constant 0 : i32
    return %arg1, %c0_i32, %c0_i32_0 : i32, i32, i32
  }
  func.func @transform_3(%arg0: i32, %arg1: i32) -> (i32, i32, i32) {
    %c0_i32 = arith.constant 0 : i32
    %c0_i32_0 = arith.constant 0 : i32
    %c0_i32_1 = arith.constant 0 : i32
    return %arg1, %c0_i32, %c0_i32_0 : i32, i32, i32
  }
  func.func @transform_4(%arg0: i32, %arg1: i32) -> (i32, i32, i32) {
    %c0_i32 = arith.constant 0 : i32
    %c0_i32_0 = arith.constant 0 : i32
    %c0_i32_1 = arith.constant 0 : i32
    return %arg1, %c0_i32, %c0_i32_0 : i32, i32, i32
  }
  func.func @transform_5(%arg0: i32, %arg1: i32) -> (i32, i32, i32) {
    %c0_i32 = arith.constant 0 : i32
    %c0_i32_0 = arith.constant 0 : i32
    %c0_i32_1 = arith.constant 0 : i32
    return %arg1, %c0_i32, %c0_i32_0 : i32, i32, i32
  }
  func.func @transform_6(%arg0: i32, %arg1: i32) -> (i32, i32, i32) {
    %c0_i32 = arith.constant 0 : i32
    %c0_i32_0 = arith.constant 0 : i32
    %c0_i32_1 = arith.constant 0 : i32
    return %arg1, %c0_i32, %c0_i32_0 : i32, i32, i32
  }
  func.func @transform_7(%arg0: i32, %arg1: i32) -> (i32, i32, i32) {
    %c0_i32 = arith.constant 0 : i32
    %c0_i32_0 = arith.constant 0 : i32
    %c0_i32_1 = arith.constant 0 : i32
    return %arg1, %c0_i32, %c0_i32_0 : i32, i32, i32
  }
  func.func @transform_8(%arg0: i32, %arg1: i32) -> (i32, i32, i32) {
    %c0_i32 = arith.constant 0 : i32
    %c0_i32_0 = arith.constant 0 : i32
    %c0_i32_1 = arith.constant 0 : i32
    return %arg1, %c0_i32, %c0_i32_0 : i32, i32, i32
  }
  func.func @transform_9(%arg0: i32, %arg1: i32) -> (i32, i32, i32) {
    %c0_i32 = arith.constant 0 : i32
    %c0_i32_0 = arith.constant 0 : i32
    %c0_i32_1 = arith.constant 0 : i32
    return %arg0, %c0_i32, %c0_i32_0 : i32, i32, i32
  }
}

</mosaic_0001>

<bundles_post_ra>
// kernel: model_forward.3
= control target key start
LH: loop header
LB: loop body
LE: loop exit
PB: predicated region body
PF: predicated region fallthrough
CT: control target
= control target key end

     0   :  { %9 = vsyncpa [#allocation3], 0  ;;  %s669_s0 = inlined_call_operand.vmem [shape: f32[2,8,32], index: 0, kind: input, shape index: {}]   ;;  %s670_s1 = inlined_call_operand.vmem [shape: f32[1,32], index: 1, kind: input, shape index: {}]   ;;  %s671_s2 = inlined_call_operand.vmem [shape: f32[1,32], index: 2, kind: input, shape index: {}]   ;;  %s672_s3 = inlined_call_operand.vmem [shape: f32[32,128], index: 3, kind: input, shape index: {}]   ;;  %s673_s4 = inlined_call_operand.hbm [shape: f32[2,8,128], index: 4, kind: output, shape index: {}]  }
   0x1   :  { %11 = vsyncpa [#allocation3 + $0x1], 0  ;;  %s548_s15 = smov 0   ;;  %s550_s16 = smov 0  }
   0x2   :  { %s552_s17 = smov 0   ;;  %s554_s18 = smov 0  }
   0x3 LB: > { %s569_s19 = sadd.s32 4294967295, %s517_s18   ;;  %s376_s20 = sadd.s32 4294967294, %s517_s18   ;;  %s517_s18 = sphi %s554_s18, %s679_s18   ;;  %s513_s17 = sphi %s552_s17, %s678_s17   ;;  %s509_s16 = sphi %s550_s16, %s677_s16   ;;  %s505_s15 = sphi %s548_s15, %s676_s15  }
   0x4   : > { %s573_s21 = sadd.s32 1, %s517_s18   ;;  %s113_s22 = sadd.s32 1, %s513_s17 }
   0x5   : > { %s110_s23 = ssub.s32 %s517_s18, %s573_s21  ;;  %p123_p0 = scmp.ne.s32.totalorder %s513_s17, %s509_s16 }
   0x6   : > { %p111_p1 = scmp.eq.s32.totalorder %s110_s23, 0  ;;  %p124_p2 = scmp.eq.s32.totalorder %s569_s19, 1 }
   0x7   : > { %p129_p3 = scmp.ne.s32.totalorder %s509_s16, %s505_s15  ;;  %p130_p4 = scmp.eq.s32.totalorder %s376_s20, 1 }
   0x8   : > { %s584_s24 = scalar_select %p111_p1, %s513_s17, %s113_s22  }
   0x9   : > { %p586_p5 = por %p124_p2, %p123_p0  ;;  %p590_p6 = por %p130_p4, %p129_p3 }
   0xa   : > { %p379_p7 = scmp.ge.s32.totalorder %s517_s18, 1  ;;  %p164_p8 = scmp.lt.s32.totalorder %s517_s18, 3 }
   0xc   : > { %p165_p9 = pnand %p379_p7, %p164_p8 }
   0xd   : > { %p189_p10 = scmp.lt.s32.totalorder (!%p165_p9), %s569_s19, 1  ;;  %vm196_vm0 = vcmask (!%p165_p9), 261120   ;;  %v225_v7 = vld [vmem:[%s672_s3] sm:$0xff] (!%p165_p9)  ;;  %v226_v8 = vld [vmem:[%s672_s3 + $0x8] sm:$0xff] (!%p165_p9)  ;;  %v227_v9 = vld [vmem:[%s672_s3 + $0x10] sm:$0xff] (!%p165_p9)  ;;  %v519_v10 = vmov (!%p165_p9), 0.0|0.0  }
   0xe   : > { %168 = sbr.rel (%p165_p9) target bundleno = 565 (0x235), region = 36  ;;  %405 = vmatprep.subr.bf16.mxu0 (!%p165_p9), %v519_v10  ;;  %v406_v11 = vpack.c.bf16 (!%p165_p9), %v226_v8, %v225_v7  ;;  %v228_v12 = vld [vmem:[%s672_s3 + $0x18] sm:$0xff] (!%p165_p9)  ;;  %vm520_vm1 = vmmov (!%p165_p9), 0   ;;  %v521_v13 = vmov (!%p165_p9), 0.0   ;;  %v382_v19 = vld [vmem:[%s670_s1] ss:$0 sm:$0xff] (!%p165_p9) }
   0xf   : > { %402 = vmatprep.mubr.msk.f32.mxu0 (!%p165_p9), %vm520_vm1, %v521_v13  ;;  %v409_v14 = vpack.c.bf16 (!%p165_p9), %v228_v12, %v227_v9  ;;  %v383_v21 = vld [vmem:[%s671_s2] ss:$0 sm:$0xff] (!%p165_p9) }
  0x10   : > { %407 = vmatpush3.bf16.msra.mxu0 (!%p165_p9), %v406_v11 }
  0x11   : > { %408 = vmatprep.subr.bf16.mxu0 (!%p165_p9), %v519_v10 }
  0x14   : > { %410 = vmatpush3.bf16.msra.mxu0 (!%p165_p9), %v409_v14 }
  0x15   : > { %s190_s27 = scalar_select %p189_p10, %s569_s19, 1 }
  0x17   : > { %s381_s28 = sshll.u32 %s190_s27, 3  ;;  %s186_s27 = sand.u32 1, %s509_s16  }
  0x18   : > { %s192_s5 = scalar_lea.vmem %s669_s0, %s381_s28  ;;  %s380_s28 = sshll.u32 %s186_s27, 3 }
  0x19   : > { %v193_v0 = vld [vmem:[%s192_s5] sm:$0xff]  ;;  %s188_s29 = scalar_lea.vmem [#allocation2], %s380_s28  ;;  %s386_s5 = sshll.u32 %s569_s19, 7 }
  0x1a   : > { %v197_v1 = vsel %vm196_vm0, %v193_v0, 0.0  ;;  %s317_s30 = sshll.u32 %s188_s29, 4  ;;  %s629_s8 = scalar_lea.hbm %s673_s4, %s386_s5  ;;  %s624_s30 = int_to_ptr.vmem [resolvable:$true] %s317_s30 }
  0x1b   : > { %198 = vadd.xlane.f32.xlu0 %v197_v1  ;;  %s304_s9 = scalar_lea.sflag [#allocation3], %s186_s27  ;;  %s455_s10 = scalar_lea.vmem %s624_s30, 128 }
  0x1c   : > { %p456_p11 = scmp.ne.s32.totalorder %s624_s30, %s455_s10  ;;  %s522_s19 = smov [#allocation2]  }
  0x1d   : > { %s459_s11 = sshll.u32 %s522_s19, 4  ;;  %s460_s11 = int_to_ptr.vmem [resolvable:$false] %s459_s11 }
  0x1e   : > { %p457_p12 = pnand %p456_p11, %p586_p5  ;;  %s461_s12 = scalar_lea.vmem %s460_s11, 256 }
  0x1f   : > { %p462_p0 = scmp.lt.s32.totalorder %s624_s30, %s460_s11  ;;  %p463_p1 = scmp.lt.s32.totalorder %s461_s12, %s455_s10 }
  0x20   : > { %p458_p13 = pneg %p457_p12 }
  0x21   : > { %p464_p2 = por %p463_p1, %p462_p0 }
  0x23   : > { %p465_p3 = pnand %p464_p2, %p458_p13 }
  0xa8   : > { %v199_v2 = vpop.xlane.xlu0 %198 }
  0xa9   : > { %v201_v3 = vmul.f32 0.03125, %v199_v2 }
  0xab   : > { %v202_v4 = vsub.f32 %v193_v0, %v201_v3 }
  0xad   : > { %v203_v5 = vmul.f32 %v202_v4, %v202_v4 }
  0xaf   : > { %v204_v6 = vsel %vm196_vm0, %v203_v5, 0.0 }
  0xb0   : > { %205 = vadd.xlane.f32.xlu0 %v204_v6 }
 0x13d   : > { %v206_v15 = vpop.xlane.xlu0 %205 }
 0x13e   : > { %v207_v16 = vmul.f32 0.03125, %v206_v15 }
 0x140   : > { %v208_v17 = vadd.f32 1e-05, %v207_v16 }
 0x142   : > { %453 = vrsqrt.f32 %v208_v17 }
 0x14c   : > { %v454_v18 = vpop.eup %453 }
 0x14d   : > { %v210_v20 = vmul.f32 %v454_v18, %v202_v4 }
 0x14f   : > { %v217_v22 = vmul.f32 %v382_v19, %v210_v20 }
 0x151   : > { %v224_v23 = vadd.f32 %v383_v21, %v217_v22 }
 0x153   : > { %403 = vmatmul.mubr.msk.f32.vlgmr.msra.gmra.mrb[0].mxu0 %vm196_vm0, %v224_v23 }
 0x226   : > { %v298_v24 = vpop.f32.mrb[0].mxu0 }
 0x227   : > { %302 = vst [vmem:[%s188_s29] sm:$0xff] %v298_v24  ;;  %v404_v25 = vpop.f32.mrb[1].mxu0 }
 0x228   : > { %468 = shalt.err (!%p465_p3)
}
 0x229   : > { %s469_s13 = scalar_lea.hbm %s629_s8, 128  ;;  %s473_s22 = scalar_lea.hbm %s673_s4, 256 }
 0x22a   : > { %p470_p4 = scmp.ne.s32.totalorder %s629_s8, %s469_s13  ;;  %p474_p9 = scmp.lt.u32.totalorder %s629_s8, %s673_s4 }
 0x22b   : > { %p475_p10 = scmp.lt.u32.totalorder %s473_s22, %s469_s13  ;;  %p477_p12 = scmp.lt.u32.totalorder %s469_s13, %s629_s8 }
 0x22c   : > { %p471_p7 = pnand %p470_p4, %p586_p5 }
 0x22d   : > { %p476_p11 = por %p475_p10, %p474_p9 }
 0x22e   : > { %p472_p8 = pneg %p471_p7 }
 0x22f   : > { %p478_p13 = por %p477_p12, %p476_p11 }
 0x231   : > { %p479_p0 = pnand %p478_p13, %p472_p8 }
 0x233   : > { %482 = shalt.err (!%p479_p0)
}
 0x234   : > { %411 = dma.vmem_to_hbm [thread:$0]  (%p586_p5), %s624_s30, 128, %s629_s8, %s304_s9  }
 0x235 PF: > { %p417_p1 = scmp.ge.s32.totalorder %s517_s18, 2  ;;  %s329_s28 = sand.u32 1, %s505_s15  }
 0x236   : > { %s330_s29 = scalar_lea.sflag [#allocation3], %s329_s28 }
 0x237   : > { %p414_p2 = pnand %p417_p1, %p590_p6 }
 0x239   : > { %500 = dma.done.wait (!%p414_p2), %s330_s29, 128  }
 0x23a   : > { %502 = vsyncadd (!%p414_p2), %s330_s29, 4294967168  ;;  %p14_p3 = scmp.ge.s32.totalorder %s573_s21, 4   ;;  %s676_s15 = smov %s509_s16 }
 0x23b   : > { %s677_s16 = smov %s513_s17  ;;  %s678_s17 = smov %s584_s24 }
 0x23c   : > { %s679_s18 = smov %s573_s21  ;;  %16 = sbr.rel (!%p14_p3) target bundleno = 3 (0x3), region = 71 }
 0x243   :  { %335 = vsyncpa [#allocation3], 1 }
 0x244   :  { %337 = vsyncpa [#allocation3 + $0x1], 1 }

// kernel: model_forward.2
= control target key start
LH: loop header
LB: loop body
LE: loop exit
PB: predicated region body
PF: predicated region fallthrough
CT: control target
= control target key end

     0   :  { %s2062_s30 = smov 0   ;;  %s2064_s10 = smov 0   ;;  %s2297_s0 = inlined_call_operand.vmem [shape: f32[2,8,32], index: 0, kind: input, shape index: {}, may-alias: {0,9}]   ;;  %s2298_s1 = inlined_call_operand.vmem [shape: f32[2,1,32], index: 1, kind: input, shape index: {}]   ;;  %s2299_s2 = inlined_call_operand.vmem [shape: f32[2,1,32], index: 2, kind: input, shape index: {}]   ;;  %s2300_s3 = inlined_call_operand.vmem [shape: bf16[2,32,96], index: 3, kind: input, shape index: {}]   ;;  %s2301_s4 = inlined_call_operand.vmem [shape: bf16[2,32,32], index: 4, kind: input, shape index: {}]   ;;  %s2302_s5 = inlined_call_operand.vmem [shape: f32[2,1,32], index: 5, kind: input, shape index: {}]   ;;  %s2303_s6 = inlined_call_operand.vmem [shape: f32[2,1,32], index: 6, kind: input, shape index: {}]   ;;  %s2304_s7 = inlined_call_operand.vmem [shape: bf16[2,32,128], index: 7, kind: input, shape index: {}]   ;;  %s2305_s8 = inlined_call_operand.vmem [shape: bf16[2,128,32], index: 8, kind: input, shape index: {}]   ;;  %s2306_s9 = inlined_call_operand.vmem [shape: f32[2,8,32], index: 9, kind: output, shape index: {}, may-alias: {0,9}]  }
   0x1   :  { %2308 = sst [smem:[#allocation7_spill]] %s2297_s0  ;;  %s2066_s11 = smov 0  }
   0x2   :  { %2309 = sst [smem:[#allocation8_spill]] %s2300_s3  ;;  %s2068_s12 = smov 0  }
   0x3   :  { %2310 = sst [smem:[#allocation9_spill]] %s2301_s4  ;;  %s2070_s13 = smov 0  }
   0x4 LB: > { %2311 = sst [smem:[#allocation4_spill]] %s1990_s12  ;;  %s28_s14 = sadd.s32 1, %s1986_s11  ;;  %s1994_s13 = sphi %s2070_s13, %s19_s13   ;;  %s1990_s12 = sphi %s2068_s12, %s2321_s12   ;;  %s1986_s11 = sphi %s2066_s11, %s2323_s11   ;;  %s1982_s10 = sphi %s2064_s10, %s2319_s10   ;;  %s1978_s30 = sphi %s2062_s30, %s2322_s30  }
   0x5   : > { %s31_s15 = sadd.s32 1, %s1990_s12  ;;  %p29_p0 = scmp.ge.s32.totalorder %s28_s14, 2 }
   0x6   : > { %p1695_p1 = scmp.ge.s32.totalorder %s1994_s13, 1  ;;  %p370_p2 = scmp.lt.s32.totalorder %s1994_s13, 5 }
   0x7   : > { %s2325_s14 = smov (%p29_p0, %s28_s14), 0  ;;  %s2327_s15 = smov (!%p29_p0, %s31_s15), %s1990_s12 }
   0x8   : > { %2312 = sst [smem:[#allocation5_spill]] %s2325_s14  ;;  %p371_p3 = pnand %p1695_p1, %p370_p2 }
   0x9   : > { %p33_p4 = scmp.ge.s32.totalorder %s2327_s15, 2  ;;  %p436_p5 = scmp.lt.s32.totalorder (!%p371_p3), %s1982_s10, 1 }
   0xa   : > { %374 = sbr.rel (%p371_p3) target bundleno = 2550 (0x9f6), region = 56  ;;  %p440_p6 = scmp.lt.s32.totalorder (!%p371_p3), %s1978_s30, 1 }
   0xb   : > { %s2329_s15 = smov (%p33_p4, %s2327_s15), 0  ;;  %s2314_s0 = sld [smem:[#allocation7_spill]] (!%p371_p3) }
   0xc   : > { %2313 = sst [smem:[#allocation6_spill]] %s2329_s15  ;;  %s2315_s3 = sld [smem:[#allocation8_spill]] (!%p371_p3) }
   0xd   : > { %s2316_s4 = sld [smem:[#allocation9_spill]] (!%p371_p3)  ;;  %p1706_p7 = scmp.ne.s32.totalorder (!%p371_p3), %s1978_s30, 0 }
  0x11   : > { %s2331_s10 = smov (!%p436_p5, %s1982_s10), 1  ;;  %vm482_vm0 = vcmask (!%p1706_p7), 261120  }
  0x12   : > { %s2096_s16 = scalar_select %p440_p6, %s1978_s30, 1 }
  0x13   : > { %s1696_s17 = sshll.u32 %s2331_s10, 3  ;;  %480 = sbr.rel (%p1706_p7) target bundleno = 26 (0x1a), region = 60 }
  0x14   : > { %s439_s20 = scalar_lea.vmem %s2314_s0, %s1696_s17  ;;  %s1742_s27 = sshll.u32 %s2096_s16, 4 }
  0x15   : > { %s450_s15 = scalar_lea.vmem %s2315_s3, %s1742_s27  ;;  %s2116_s10 = scalar_lea.vmem %s2316_s4, %s1742_s27  ;;  %v481_v0 = vld [vmem:[%s439_s20] sm:$0xff] (!%p1706_p7) }
  0x16   : > { %s458_s0 = scalar_lea.vmem %s2302_s5, %s2096_s16  ;;  %s461_s23 = scalar_lea.vmem %s2303_s6, %s2096_s16 }
  0x17   : > { %s2129_s26 = scalar_lea.vmem %s2304_s7, %s1742_s27  ;;  %s1745_s28 = sshll.u32 %s2096_s16, 6 }
  0x18   : > { %s2135_s12 = scalar_lea.vmem %s2305_s8, %s1745_s28  ;;  %s2140_s18 = scalar_lea.vmem %s2306_s9, %s1696_s17 }
  0x19   : > { %483 = vst.msk [vmem:[%s2140_s18] sm:$0xff] (!%p1706_p7), %vm482_vm0, %v481_v0 }
  0x1a PF: > { %vm487_vm1 = vcmask 261120   ;;  %v1920_v8 = vld [vmem:[%s450_s15] sm:$0xff]   ;;  %v1996_v9 = vmov 0.0   ;;  %vm1997_vm2 = vmmov 0   ;;  %v1921_v10 = vld [vmem:[%s450_s15 + $0x8] sm:$0xff]   ;;  %s2317_s30 = scalar_lea.vmem %s2298_s1, %s2096_s16  ;;  %s2318_s20 = scalar_lea.vmem %s2299_s2, %s2096_s16  ;;  %vm585_vm3 = vcmask 64512  }
  0x1b   : > { %1780 = vmatprep.subr.bf16.mxu0 %v1996_v9  ;;  %1784 = vmatprep.mubr.msk.bf16.mxu0 %vm1997_vm2, %v1996_v9  ;;  %v1707_v15 = vld [vmem:[%s2317_s30] ss:$0 sm:$0xff]  ;;  %s1998_s27 = smov 96   ;;  %s1999_s19 = smov 120   ;;  %v577_v33 = vlaneseq  ;;  %vm1108_vm5 = vcmask 130112   ;;  %vm1190_vm6 = vcmask 195712  }
  0x1c   : > { %1781 = vmatpush3.bf16.msra.mxu0 %v1920_v8  ;;  %1793 = vmatprep.subr.mxu1 %v1996_v9  ;;  %v1708_v17 = vld [vmem:[%s2318_s20] ss:$0 sm:$0xff]  ;;  %s2000_s21 = smov 88   ;;  %s2001_s22 = smov 80   ;;  %vm1272_vm7 = vcmask 261312  }
  0x1d   : > { %1782 = vmatprep.subr.bf16.mxu0 %v1996_v9  ;;  %1795 = vmatprep.mubr.msk.f32.mxu1 %vm1997_vm2, %v1996_v9  ;;  %s2002_s24 = smov 72   ;;  %s2003_s25 = smov 112   ;;  %v578_v34 = vshrl.u32 %v577_v33, 7  ;;  %v580_v35 = vand.u32 127, %v577_v33  ;;  %v1923_v33 = vld [vmem:[%s2116_s10 + $0x8] sm:$0xff]  }
  0x1e   : > { %s2004_s28 = smov 104   ;;  %s2005_s29 = smov 64  }
  0x1f   : > { %vm581_vm4 = vcmp.ge.s32.totalorder %v578_v34, %v580_v35  ;;  %s2006_s14 = smov 48   ;;  %s2007_s3 = smov 40  }
  0x20   : > { %v2145_v1 = vld [vmem:[%s2140_s18] sm:$0xff]  ;;  %1783 = vmatpush3.bf16.msra.mxu0 %v1921_v10  ;;  %s2008_s4 = smov 56   ;;  %s2009_s30 = smov 8  }
  0x21   : > { %v488_v2 = vsel %vm487_vm1, %v2145_v1, 0.0  ;;  %1788 = vmatprep.subr.mxu0 %v1996_v9  ;;  %s2010_s15 = smov 16   ;;  %s2011_s17 = smov 24  }
  0x22   : > { %489 = vadd.xlane.f32.xlu0 %v488_v2 }
  0xaf   : > { %v490_v3 = vpop.xlane.xlu0 %489 }
  0xb0   : > { %v492_v4 = vmul.f32 0.03125, %v490_v3 }
  0xb2   : > { %v493_v5 = vsub.f32 %v2145_v1, %v492_v4 }
  0xb4   : > { %v494_v6 = vmul.f32 %v493_v5, %v493_v5 }
  0xb6   : > { %v495_v7 = vsel %vm487_vm1, %v494_v6, 0.0 }
  0xb7   : > { %496 = vadd.xlane.f32.xlu0 %v495_v7 }
 0x144   : > { %v497_v11 = vpop.xlane.xlu0 %496 }
 0x145   : > { %v498_v12 = vmul.f32 0.03125, %v497_v11 }
 0x147   : > { %v499_v13 = vadd.f32 1e-05, %v498_v12 }
 0x149   : > { %1934 = vrsqrt.f32 %v499_v13 }
 0x153   : > { %v1935_v14 = vpop.eup %1934 }
 0x154   : > { %v501_v16 = vmul.f32 %v1935_v14, %v493_v5 }
 0x156   : > { %v508_v18 = vmul.f32 %v1707_v15, %v501_v16 }
 0x158   : > { %v515_v19 = vadd.f32 %v1708_v17, %v508_v18 }
 0x15a   : > { %v516_v20 = vpack.c.bf16 %v515_v19, %v515_v19 }
 0x15c   : > { %1785 = vmatmul.mubr.msk.bf16.vlgmr.msra.gmra.mrb[0].mxu0 %vm487_vm1, %v516_v20 }
 0x15d   : > { %1790 = vmatprep.mubr.msk.f32.mxu0 %vm1997_vm2, %v1996_v9 }
 0x22f   : > { %v2172_v21 = vpop.f32.mrb[0].mxu0 }
 0x230   : > { %583 = vrot.lane.b32.xlu1 %v2172_v21, %s1998_s27  ;;  %v1786_v22 = vpop.f32.mrb[1].mxu0  ;;  %v576_v23 = vmul.f32 0.35355338, %v2172_v21 }
 0x231   : > { %v573_v24 = vpop.f32.mrb[2].mxu0 }
 0x232   : > { %663 = vrot.lane.b32.xlu0 %v576_v23, %s1999_s19  ;;  %v1787_v25 = vpop.f32.mrb[3].mxu0 }
 0x234   : > { %665 = vrot.lane.b32.xlu1 %v2172_v21, %s2000_s21 }
 0x238   : > { %745 = vrot.lane.b32.xlu1 %v2172_v21, %s2001_s22 }
 0x23c   : > { %825 = vrot.lane.b32.xlu1 %v2172_v21, %s2002_s24 }
 0x240   : > { %743 = vrot.lane.b32.xlu1 %v576_v23, %s2003_s25 }
 0x244   : > { %823 = vrot.lane.b32.xlu1 %v576_v23, %s2004_s28 }
 0x2a2   : > { %v584_v26 = vpop.permute.xlu1 %583 }
 0x2a3   : > { %1789 = vmatpush3.xpose.msk.msra.mxu0 %vm585_vm3, %v584_v26 }
 0x2a4   : > { %1803 = vmatprep.subr.mxu0 %v1996_v9  ;;  %v664_v28 = vpop.permute.xlu0 %663 }
 0x2a6   : > { %v666_v27 = vpop.permute.xlu1 %665  ;;  %1791 = vmatmul.mubr.msk.f32.vlgmr.msra.gmra.mrb[4].mxu0 %vm585_vm3, %v576_v23 }
 0x2a7   : > { %1794 = vmatpush3.xpose.msk.msra.mxu1 %vm585_vm3, %v666_v27  ;;  %1805 = vmatprep.mubr.msk.f32.mxu0 %vm1997_vm2, %v1996_v9 }
 0x2a8   : > { %1798 = vmatprep.subr.mxu1 %v1996_v9 }
 0x2aa   : > { %v746_v29 = vpop.permute.xlu1 %745  ;;  %1796 = vmatmul.mubr.msk.f32.vlgmr.msra.gmra.mrb[0].mxu1 %vm585_vm3, %v664_v28 }
 0x2ab   : > { %1799 = vmatpush3.xpose.msk.msra.mxu1 %vm585_vm3, %v746_v29  ;;  %1800 = vmatprep.mubr.msk.f32.mxu1 %vm1997_vm2, %v1996_v9 }
 0x2ac   : > { %1808 = vmatprep.subr.mxu1 %v1996_v9 }
 0x2ae   : > { %v826_v30 = vpop.permute.xlu1 %825 }
 0x2af   : > { %1804 = vmatpush3.xpose.msk.msra.mxu0 %vm585_vm3, %v826_v30 }
 0x2b0   : > { %1813 = vmatprep.subr.mxu0 %v1996_v9 }
 0x2b2   : > { %v744_v31 = vpop.permute.xlu1 %743 }
 0x2b3   : > { %1801 = vmatmul.mubr.msk.f32.vlgmr.msra.gmra.mrb[2].mxu1 %vm585_vm3, %v744_v31 }
 0x2b4   : > { %1810 = vmatprep.mubr.msk.f32.mxu1 %vm1997_vm2, %v1996_v9 }
 0x2b6   : > { %v824_v32 = vpop.permute.xlu1 %823 }
 0x2b7   : > { %1806 = vmatmul.mubr.msk.f32.vlgmr.msra.gmra.mrb[6].mxu0 %vm585_vm3, %v824_v32  ;;  %v1922_v32 = vld [vmem:[%s2116_s10] sm:$0xff]  }
 0x2b8   : > { %1815 = vmatprep.mubr.msk.f32.mxu0 %vm1997_vm2, %v1996_v9 }
 0x379   : > { %v657_v36 = vpop.f32.mrb[4].mxu0 }
 0x37a   : > { %v661_v37 = vsel %vm581_vm4, %v657_v36, -1e+30  ;;  %v1792_v38 = vpop.f32.mrb[5].mxu0 }
 0x37b   : > { %662 = vst.msk [vmem:[#allocation2] sm:$0xff] %vm585_vm3, %v661_v37 }
 0x37d   : > { %v737_v39 = vpop.f32.mrb[0].mxu1 }
 0x37e   : > { %v741_v40 = vsel %vm581_vm4, %v737_v39, -1e+30  ;;  %v1797_v41 = vpop.f32.mrb[1].mxu1 }
 0x37f   : > { %742 = vst.msk [vmem:[#allocation2 + $0x8] sm:$0xff] %vm585_vm3, %v741_v40 }
 0x382   : > { %v903_v42 = vld [vmem:[#allocation2] sm:$0xff] }
 0x383   : > { %v907_v43 = vsel %vm585_vm3, %v903_v42, -inf }
 0x384   : > { %908 = vmax.xlane.f32.xlu1 %v907_v43 }
 0x386   : > { %v817_v44 = vpop.f32.mrb[2].mxu1  ;;  %v904_v45 = vld [vmem:[#allocation2 + $0x8] sm:$0xff] }
 0x387   : > { %v821_v46 = vsel %vm581_vm4, %v817_v44, -1e+30  ;;  %v1802_v47 = vpop.f32.mrb[3].mxu1  ;;  %v910_v48 = vsel %vm585_vm3, %v904_v45, -inf }
 0x388   : > { %822 = vst.msk [vmem:[#allocation2 + $0x10] sm:$0xff] %vm585_vm3, %v821_v46  ;;  %911 = vmax.xlane.f32.xlu0 %v910_v48 }
 0x38a   : > { %v897_v49 = vpop.f32.mrb[6].mxu0 }
 0x38b   : > { %v901_v50 = vsel %vm581_vm4, %v897_v49, -1e+30  ;;  %v1807_v51 = vpop.f32.mrb[7].mxu0 }
 0x38c   : > { %902 = vst.msk [vmem:[#allocation2 + $0x18] sm:$0xff] %vm585_vm3, %v901_v50 }
 0x38f   : > { %v905_v52 = vld [vmem:[#allocation2 + $0x10] sm:$0xff] }
 0x390   : > { %v913_v53 = vsel %vm585_vm3, %v905_v52, -inf }
 0x391   : > { %914 = vmax.xlane.f32.xlu1 %v913_v53 }
 0x393   : > { %v906_v54 = vld [vmem:[#allocation2 + $0x18] sm:$0xff] }
 0x394   : > { %v916_v55 = vsel %vm585_vm3, %v906_v54, -inf }
 0x395   : > { %917 = vmax.xlane.f32.xlu0 %v916_v55 }
 0x3a2   : > { %951 = vrot.lane.b32.xlu1 %v2172_v21, %s2005_s29 }
 0x411   : > { %v909_v56 = vpop.xlane.xlu1 %908 }
 0x412   : > { %v919_v57 = vsub.f32 %v903_v42, %v909_v56  ;;  %v1924_v56 = vld [vmem:[%s2129_s26] sm:$0xff]  }
 0x414   : > { %v923_v58 = vmul.f32 1.442695, %v919_v57  ;;  %v1925_v57 = vld [vmem:[%s2129_s26 + $0x8] sm:$0xff]  }
 0x415   : > { %v912_v59 = vpop.xlane.xlu0 %911 }
 0x416   : > { %1936 = vpow2.f32 %v923_v58  ;;  %v920_v60 = vsub.f32 %v904_v45, %v912_v59  ;;  %v1335_v45 = vmul.f32 0.5, %v2145_v1  ;;  %v1926_v58 = vld [vmem:[%s2135_s12] sm:$0xff]  }
 0x418   : > { %v925_v61 = vmul.f32 1.442695, %v920_v60 }
 0x41a   : > { %1938 = vpow2.f32 %v925_v61 }
 0x41e   : > { %v915_v62 = vpop.xlane.xlu1 %914 }
 0x41f   : > { %v921_v63 = vsub.f32 %v905_v52, %v915_v62 }
 0x420   : > { %v1937_v0 = vpop.eup %1936 }
 0x421   : > { %v927_v2 = vmul.f32 1.442695, %v921_v63  ;;  %v931_v3 = vsel %vm585_vm3, %v1937_v0, 0.0  ;;  %v1727_v63 = vld [vmem:[%s458_s0] ss:$0 sm:$0xff] }
 0x422   : > { %932 = vadd.xlane.f32.xlu1 %v931_v3  ;;  %v952_v4 = vpop.permute.xlu1 %951  ;;  %v918_v5 = vpop.xlane.xlu0 %917 }
 0x423   : > { %1940 = vpow2.f32 %v927_v2  ;;  %v922_v6 = vsub.f32 %v906_v54, %v918_v5  ;;  %1809 = vmatpush3.msra.mxu1 %v952_v4  ;;  %v1728_v2 = vld [vmem:[%s461_s23] ss:$0 sm:$0xff] }
 0x424   : > { %v1939_v7 = vpop.eup %1938  ;;  %1818 = vmatprep.subr.mxu1 %v1996_v9 }
 0x425   : > { %v929_v8 = vmul.f32 1.442695, %v922_v6  ;;  %v934_v10 = vsel %vm585_vm3, %v1939_v7, 0.0  ;;  %v1927_v6 = vld [vmem:[%s2135_s12 + $0x8] sm:$0xff]  }
 0x426   : > { %935 = vadd.xlane.f32.xlu0 %v934_v10  ;;  %v1930_v10 = vld [vmem:[%s2135_s12 + $0x20] sm:$0xff]  }
 0x427   : > { %1942 = vpow2.f32 %v929_v8  ;;  %v1929_v8 = vld [vmem:[%s2135_s12 + $0x18] sm:$0xff]  }
 0x42d   : > { %v1941_v11 = vpop.eup %1940 }
 0x42e   : > { %v937_v12 = vsel %vm585_vm3, %v1941_v11, 0.0 }
 0x42f   : > { %938 = vadd.xlane.f32.xlu1 %v937_v12  ;;  %v1932_v12 = vld [vmem:[%s2135_s12 + $0x30] sm:$0xff]  }
 0x431   : > { %v1943_v13 = vpop.eup %1942 }
 0x432   : > { %v940_v14 = vsel %vm585_vm3, %v1943_v13, 0.0 }
 0x433   : > { %941 = vadd.xlane.f32.xlu0 %v940_v14 }
 0x440   : > { %1110 = vrot.lane.b32.xlu1 %v2172_v21, %s2006_s14 }
 0x444   : > { %1192 = vrot.lane.b32.xlu1 %v2172_v21, %s2007_s3 }
 0x449   : > { %1028 = vrot.lane.b32.xlu0 %v2172_v21, %s2008_s4 }
 0x4af   : > { %v933_v15 = vpop.xlane.xlu1 %932 }
 0x4b0   : > { %1944 = vrcp.f32 %v933_v15 }
 0x4b3   : > { %v936_v16 = vpop.xlane.xlu0 %935 }
 0x4b4   : > { %1946 = vrcp.f32 %v936_v16 }
 0x4ba   : > { %v1945_v17 = vpop.eup %1944 }
 0x4bb   : > { %v947_v18 = vmul.f32 %v1945_v17, %v1937_v0 }
 0x4bc   : > { %v939_v19 = vpop.xlane.xlu1 %938 }
 0x4bd   : > { %1948 = vrcp.f32 %v939_v19  ;;  %1811 = vmatmul.mubr.msk.f32.vlgmr.msra.gmra.mrb[4].mxu1 %vm585_vm3, %v947_v18 }
 0x4be   : > { %1820 = vmatprep.mubr.msk.f32.mxu1 %vm1997_vm2, %v1996_v9  ;;  %v1947_v23 = vpop.eup %1946 }
 0x4bf   : > { %v948_v21 = vmul.f32 %v1947_v23, %v1939_v7  ;;  %v1928_v7 = vld [vmem:[%s2135_s12 + $0x10] sm:$0xff]  }
 0x4c0   : > { %v1111_v20 = vpop.permute.xlu1 %1110  ;;  %v942_v22 = vpop.xlane.xlu0 %941 }
 0x4c1   : > { %1950 = vrcp.f32 %v942_v22  ;;  %1819 = vmatpush3.msra.mxu1 %v1111_v20 }
 0x4c2   : > { %1844 = vmatprep.subr.bf16.mxu1 %v1996_v9 }
 0x4c4   : > { %v1029_v24 = vpop.permute.xlu0 %1028  ;;  %v1193_v25 = vpop.permute.xlu1 %1192 }
 0x4c5   : > { %1814 = vmatpush3.msra.mxu0 %v1029_v24 }
 0x4c6   : > { %1816 = vmatmul.mubr.msk.f32.vlgmr.msra.gmra.mrb[8].mxu0 %vm585_vm3, %v948_v21  ;;  %1823 = vmatprep.subr.mxu0 %v1996_v9 }
 0x4c7   : > { %v1949_v26 = vpop.eup %1948  ;;  %1824 = vmatpush3.msra.mxu0 %v1193_v25  ;;  %1825 = vmatprep.mubr.msk.f32.mxu0 %vm1997_vm2, %v1996_v9 }
 0x4c8   : > { %v949_v27 = vmul.f32 %v1949_v26, %v1941_v11  ;;  %1828 = vmatprep.subr.bf16.mxu0 %v1996_v9  ;;  %v1931_v11 = vld [vmem:[%s2135_s12 + $0x28] sm:$0xff]  }
 0x4ca   : > { %1821 = vmatmul.mubr.msk.f32.vlgmr.msra.gmra.mrb[6].mxu1 %vm585_vm3, %v949_v27 }
 0x4cb   : > { %v1951_v28 = vpop.eup %1950  ;;  %1860 = vmatprep.mubr.msk.bf16.mxu1 %vm1997_vm2, %v1996_v9  ;;  %1845 = vmatpush3.bf16.msra.mxu1 %v1926_v58 }
 0x4cc   : > { %v950_v29 = vmul.f32 %v1951_v28, %v1943_v13  ;;  %1846 = vmatprep.subr.bf16.mxu1 %v1996_v9  ;;  %v1933_v13 = vld [vmem:[%s2135_s12 + $0x38] sm:$0xff]  }
 0x4ce   : > { %1826 = vmatmul.mubr.msk.f32.vlgmr.msra.gmra.mrb[10].mxu0 %vm585_vm3, %v950_v29 }
 0x4cf   : > { %1832 = vmatprep.mubr.msk.bf16.mxu0 %vm1997_vm2, %v1996_v9  ;;  %1829 = vmatpush3.bf16.msra.mxu0 %v1922_v32 }
 0x4d0   : > { %1830 = vmatprep.subr.bf16.mxu0 %v1996_v9  ;;  %1847 = vmatpush3.bf16.msra.mxu1 %v1927_v6 }
 0x4d1   : > { %1848 = vmatprep.subr.bf16.mxu1 %v1996_v9 }
 0x4d3   : > { %1831 = vmatpush3.bf16.msra.mxu0 %v1923_v33 }
 0x4d4   : > { %1836 = vmatprep.subr.bf16.mxu0 %v1996_v9  ;;  %1849 = vmatpush3.bf16.msra.mxu1 %v1928_v7 }
 0x4d5   : > { %1850 = vmatprep.subr.bf16.mxu1 %v1996_v9 }
 0x4d8   : > { %1851 = vmatpush3.bf16.msra.mxu1 %v1929_v8 }
 0x4d9   : > { %1852 = vmatprep.subr.bf16.mxu1 %v1996_v9 }
 0x4dc   : > { %1853 = vmatpush3.bf16.msra.mxu1 %v1930_v10 }
 0x4dd   : > { %1854 = vmatprep.subr.bf16.mxu1 %v1996_v9 }
 0x4e0   : > { %1855 = vmatpush3.bf16.msra.mxu1 %v1931_v11 }
 0x4e1   : > { %1856 = vmatprep.subr.bf16.mxu1 %v1996_v9 }
 0x4e4   : > { %1857 = vmatpush3.bf16.msra.mxu1 %v1932_v12 }
 0x4e5   : > { %1858 = vmatprep.subr.bf16.mxu1 %v1996_v9 }
 0x4e8   : > { %1859 = vmatpush3.bf16.msra.mxu1 %v1933_v13 }
 0x590   : > { %v1023_v30 = vpop.f32.mrb[4].mxu1 }
 0x591   : > { %1027 = vst.msk [vmem:[#allocation3] sm:$0xff] %vm585_vm3, %v1023_v30  ;;  %v1812_v31 = vpop.f32.mrb[5].mxu1 }
 0x599   : > { %v1100_v34 = vpop.f32.mrb[8].mxu0 }
 0x59a   : > { %1105 = vrot.lane.b32.xlu0 %v1100_v34, %s2009_s30  ;;  %v1817_v35 = vpop.f32.mrb[9].mxu0 }
 0x59d   : > { %v1182_v36 = vpop.f32.mrb[6].mxu1 }
 0x59e   : > { %1187 = vrot.lane.b32.xlu1 %v1182_v36, %s2010_s15  ;;  %v1822_v37 = vpop.f32.mrb[7].mxu1 }
 0x5a1   : > { %v1264_v38 = vpop.f32.mrb[10].mxu0 }
 0x5a2   : > { %1269 = vrot.lane.b32.xlu0 %v1264_v38, %s2011_s17  ;;  %v1827_v39 = vpop.f32.mrb[11].mxu0 }
 0x60c   : > { %v1106_v40 = vpop.permute.xlu0 %1105 }
 0x60d   : > { %1109 = vst.msk [vmem:[#allocation3] sm:$0xff] %vm1108_vm5, %v1106_v40 }
 0x610   : > { %v1188_v41 = vpop.permute.xlu1 %1187 }
 0x611   : > { %1191 = vst.msk [vmem:[#allocation3] sm:$0xff] %vm1190_vm6, %v1188_v41 }
 0x614   : > { %v1270_v42 = vpop.permute.xlu0 %1269 }
 0x615   : > { %1273 = vst.msk [vmem:[#allocation3] sm:$0xff] %vm1272_vm7, %v1270_v42 }
 0x61c   : > { %v1274_v43 = vld [vmem:[#allocation3] sm:$0xff] }
 0x61d   : > { %v1275_v44 = vpack.c.bf16 %v1274_v43, %v1274_v43 }
 0x61f   : > { %1833 = vmatmul.mubr.msk.bf16.vlgmr.msra.gmra.mrb[12].mxu0 %vm487_vm1, %v1275_v44 }
 0x620   : > { %1840 = vmatprep.mubr.msk.bf16.mxu0 %vm1997_vm2, %v1996_v9  ;;  %1837 = vmatpush3.bf16.msra.mxu0 %v1924_v56 }
 0x621   : > { %1838 = vmatprep.subr.bf16.mxu0 %v1996_v9 }
 0x624   : > { %1839 = vmatpush3.bf16.msra.mxu0 %v1925_v57 }
 0x6f2   : > { %v1329_v46 = vpop.f32.mrb[12].mxu0 }
 0x6f3   : > { %v2244_v47 = vadd.f32 %v1335_v45, %v1329_v46  ;;  %v1834_v48 = vpop.f32.mrb[13].mxu0 }
 0x6f4   : > { %v1332_v49 = vpop.f32.mrb[14].mxu0 }
 0x6f5   : > { %v1835_v50 = vpop.f32.mrb[15].mxu0  ;;  %v1339_v51 = vsel %vm487_vm1, %v2244_v47, 0.0  ;;  %v1540_v9 = vmul.f32 0.5, %v2244_v47 }
 0x6f6   : > { %1340 = vadd.xlane.f32.xlu1 %v1339_v51 }
 0x783   : > { %v1341_v52 = vpop.xlane.xlu1 %1340 }
 0x784   : > { %v1342_v53 = vmul.f32 0.03125, %v1341_v52 }
 0x786   : > { %v1343_v54 = vsub.f32 %v2244_v47, %v1342_v53 }
 0x788   : > { %v1344_v55 = vmul.f32 %v1343_v54, %v1343_v54 }
 0x78a   : > { %v1345_v1 = vsel %vm487_vm1, %v1344_v55, 0.0 }
 0x78b   : > { %1346 = vadd.xlane.f32.xlu0 %v1345_v1 }
 0x818   : > { %v1347_v59 = vpop.xlane.xlu0 %1346 }
 0x819   : > { %v1348_v60 = vmul.f32 0.03125, %v1347_v59 }
 0x81b   : > { %v1349_v61 = vadd.f32 1e-05, %v1348_v60 }
 0x81d   : > { %1952 = vrsqrt.f32 %v1349_v61 }
 0x827   : > { %v1953_v62 = vpop.eup %1952 }
 0x828   : > { %v1351_v0 = vmul.f32 %v1953_v62, %v1343_v54 }
 0x82a   : > { %v1358_v3 = vmul.f32 %v1727_v63, %v1351_v0 }
 0x82c   : > { %v1365_v4 = vadd.f32 %v1728_v2, %v1358_v3 }
 0x82e   : > { %v1366_v5 = vpack.c.bf16 %v1365_v4, %v1365_v4 }
 0x830   : > { %1841 = vmatmul.mubr.msk.bf16.vlgmr.msra.gmra.mrb[16].mxu0 %vm487_vm1, %v1366_v5 }
 0x903   : > { %v1420_v14 = vpop.f32.mrb[16].mxu0 }
 0x904   : > { %v1427_v15 = vmul.f32 0.044715, %v1420_v14  ;;  %v1842_v16 = vpop.f32.mrb[17].mxu0  ;;  %v1426_v24 = vmul.f32 0.5, %v1420_v14 }
 0x905   : > { %v1423_v17 = vpop.f32.mrb[18].mxu0 }
 0x906   : > { %v1428_v18 = vmul.f32 %v1427_v15, %v1420_v14  ;;  %v1843_v19 = vpop.f32.mrb[19].mxu0 }
 0x908   : > { %v1429_v20 = vmul.f32 %v1428_v18, %v1420_v14 }
 0x90a   : > { %v1430_v22 = vadd.f32 %v1429_v20, %v1420_v14 }
 0x90c   : > { %v1431_v23 = vmul.f32 0.7978846, %v1430_v22 }
 0x90e   : > { %1954 = vtanh.f32 %v1431_v23 }
 0x918   : > { %v1955_v21 = vpop.eup %1954 }
 0x919   : > { %v1433_v25 = vadd.f32 1.0, %v1955_v21 }
 0x91b   : > { %v1434_v26 = vmul.f32 %v1433_v25, %v1426_v24 }
 0x91d   : > { %v1435_v27 = vpack.c.bf16 %v1434_v26, %v1434_v26 }
 0x91f   : > { %1861 = vmatmul.mubr.bf16.vlgmr.msra.gmra.mrb[8].mxu1 %v1435_v27 }
 0x9f2   : > { %v1534_v28 = vpop.f32.mrb[8].mxu1 }
 0x9f3   : > { %v1541_v29 = vadd.f32 %v1540_v9, %v1534_v28  ;;  %v1862_v30 = vpop.f32.mrb[9].mxu1 }
 0x9f4   : > { %v1537_v31 = vpop.f32.mrb[10].mxu1 }
 0x9f5   : > { %1542 = vst.msk [vmem:[%s2140_s18] sm:$0xff] %vm487_vm1, %v1541_v29  ;;  %v1863_v32 = vpop.f32.mrb[11].mxu1 }
 0x9f6 PF: > { %s19_s13 = sadd.s32 1, %s1994_s13   ;;  %s2319_s10 = sld [smem:[#allocation4_spill]] }
 0x9f7   : > { %p16_p8 = scmp.ge.s32.totalorder %s19_s13, 6   ;;  %s2320_s0 = sld [smem:[#allocation5_spill]] }
 0x9f8   : > { %s2321_s12 = sld [smem:[#allocation6_spill]]  ;;  %s2322_s30 = smov %s1986_s11 }
 0x9f9   :  { %18 = sbr.rel (!%p16_p8) target bundleno = 4 (0x4), region = 114 }
 0x9fd   : > { %s2323_s11 = smov %s2320_s0 }

</bundles_post_ra>
